<compile_context>
chip_gen: v7x
topology: tpu7x:2x2x1
jax: 0.10.0
libtpu: 0.0.40
codegen_flags: <defaults>
</compile_context>

<pallas_src>
import functools

import jax
import jax.numpy as jnp
from jax.experimental import pallas as pl
from jax.experimental.pallas import tpu as pltpu

NUM_OBS = 290
NUM_ACTIONS = 8
HIDDEN = 128

DEFAULT_TB = 2048       # max batch-tile rows per grid step
MIN_TILE = 16           # row granularity (bf16 sublane packing)
SPLIT_THRESHOLD = 512   # above this many rows, force >= 2 grid steps (megacore)


def _round_up(x, m):
    return ((x + m - 1) // m) * m


def dqn_kernel(x_ref, w1_ref, b1_ref, w2_ref, b2_ref, w3_ref, b3_ref, o_ref):
    # x arrives as raw f32 (tb, 290); cast to bf16 in VMEM (no wrapper pass).
    x = x_ref[...].astype(jnp.bfloat16)
    # Layer 1: Linear(290, 128) + ReLU.  bf16 operands, f32 accumulation.
    h1 = jnp.dot(x, w1_ref[...], preferred_element_type=jnp.float32)
    h1 = jnp.maximum(h1 + b1_ref[...], 0.0).astype(jnp.bfloat16)
    # Layer 2: Linear(128, 128) + ReLU.
    h2 = jnp.dot(h1, w2_ref[...], preferred_element_type=jnp.float32)
    h2 = jnp.maximum(h2 + b2_ref[...], 0.0).astype(jnp.bfloat16)
    # Layer 3: Linear(128, 8); store the narrow (tb, 8) result directly.
    q = jnp.dot(h2, w3_ref[...], preferred_element_type=jnp.float32)
    o_ref[...] = (q + b3_ref[...]).astype(o_ref.dtype)


def prepare_params(w1, b1, w2, b2, w3, b3):
    """One-time cast of the f32 (in, out) params into kernel layout (bf16 W)."""
    return (w1.astype(jnp.bfloat16), b1.astype(jnp.float32),
            w2.astype(jnp.bfloat16), b2.astype(jnp.float32),
            w3.astype(jnp.bfloat16), b3.astype(jnp.float32))


def _choose_batch_tile(batch, tb):
    if batch <= SPLIT_THRESHOLD:
        # Single grid step (RL act() path and small/medium batches).
        return _round_up(max(batch, MIN_TILE), MIN_TILE)
    # Balanced tiles, at least 2 grid steps so both v7x TensorCores stream,
    # and the tail block is never padded to ~2x the batch.
    nsteps = max(2, pl.cdiv(batch, tb))
    return _round_up(pl.cdiv(batch, nsteps), MIN_TILE)


@functools.partial(jax.jit, static_argnames=("tb",))
def dqn_forward(x, w1p, b1p, w2p, b2p, w3p, b3p, *, tb=DEFAULT_TB):
    """x: (B, NUM_OBS) float32 -> (B, NUM_ACTIONS) float32.

    Params must come from prepare_params (bf16 weights, f32 biases).
    Note: callers in an RL loop should bucket batch sizes to avoid
    per-batch-size recompiles of this jitted wrapper.
    """
    batch = x.shape[0]
    tb_eff = _choose_batch_tile(batch, tb)

    if batch > SPLIT_THRESHOLD:
        # tb_eff < batch here; the ragged last block is handled by Pallas'
        # clipped boundary-block reads/writes (rows don't interact, so the
        # unread tail of the VMEM tile never affects valid output rows).
        x_in, rows = x, batch
    else:
        rows = tb_eff
        x_in = x if rows == batch else jnp.pad(x, ((0, rows - batch), (0, 0)))

    grid = (pl.cdiv(rows, tb_eff),)

    out = pl.pallas_call(
        dqn_kernel,
        out_shape=jax.ShapeDtypeStruct((rows, NUM_ACTIONS), jnp.float32),
        grid=grid,
        in_specs=[
            pl.BlockSpec((tb_eff, NUM_OBS), lambda i: (i, 0)),      # x tile (raw f32)
            pl.BlockSpec((NUM_OBS, HIDDEN), lambda i: (0, 0)),      # W1 (VMEM resident)
            pl.BlockSpec((1, HIDDEN), lambda i: (0, 0)),            # b1
            pl.BlockSpec((HIDDEN, HIDDEN), lambda i: (0, 0)),       # W2
            pl.BlockSpec((1, HIDDEN), lambda i: (0, 0)),            # b2
            pl.BlockSpec((HIDDEN, NUM_ACTIONS), lambda i: (0, 0)),  # W3
            pl.BlockSpec((1, NUM_ACTIONS), lambda i: (0, 0)),       # b3
        ],
        out_specs=pl.BlockSpec((tb_eff, NUM_ACTIONS), lambda i: (i, 0)),
        compiler_params=pltpu.CompilerParams(
            dimension_semantics=("parallel",),      # 2 TCs on v7x when grid >= 2
            vmem_limit_bytes=32 * 1024 * 1024),     # headroom over v5e's 16 MiB default
    )(x_in, w1p, b1p, w2p, b2p, w3p, b3p)

    return out if rows == batch else out[:batch]


def init_params(key):
    """PyTorch nn.Linear default init: U(-1/sqrt(fan_in), 1/sqrt(fan_in))."""
    ks = jax.random.split(key, 6)

    def linear(kw, kb, fan_in, fan_out):
        bound = 1.0 / jnp.sqrt(fan_in)
        w = jax.random.uniform(kw, (fan_in, fan_out), jnp.float32, -bound, bound)
        b = jax.random.uniform(kb, (1, fan_out), jnp.float32, -bound, bound)
        return w, b

    w1, b1 = linear(ks[0], ks[1], NUM_OBS, HIDDEN)
    w2, b2 = linear(ks[2], ks[3], HIDDEN, HIDDEN)
    w3, b3 = linear(ks[4], ks[5], HIDDEN, NUM_ACTIONS)
    return w1, b1, w2, b2, w3, b3


def _ref_forward(x, w1, b1, w2, b2, w3, b3, dtype=jnp.float32):
    """Plain-JAX reference (same math as PyTorch forward)."""
    xc = x.astype(dtype)
    h1 = jnp.maximum(
        jnp.dot(xc, w1.astype(dtype), preferred_element_type=jnp.float32) + b1, 0.0)
    h2 = jnp.maximum(
        jnp.dot(h1.astype(dtype), w2.astype(dtype),
                preferred_element_type=jnp.float32) + b2, 0.0)
    return jnp.dot(h2.astype(dtype), w3.astype(dtype),
                   preferred_element_type=jnp.float32) + b3


# TODO(synk): DQN.act()'s epsilon-greedy branching / Python RNG is host-side
# control flow around forward(); it is intentionally not part of the kernel.

if __name__ == "__main__":
    key = jax.random.PRNGKey(0)
    k_params, k_x1, k_x2 = jax.random.split(key, 3)

    params = init_params(k_params)
    prepped = prepare_params(*params)

    # --- Small-batch (RL act()) path: single grid step -----------------------
    batch = 2
    x_small = jax.random.normal(k_x1, (batch, NUM_OBS), jnp.float32)
    q_small = dqn_forward(x_small, *prepped)
    jax.block_until_ready(q_small)
    assert q_small.shape == (batch, NUM_ACTIONS)

    ref_f32 = _ref_forward(x_small, *params, dtype=jnp.float32)
    ref_bf16 = _ref_forward(x_small, *params, dtype=jnp.bfloat16)
    assert jnp.allclose(q_small, ref_bf16, atol=1e-2, rtol=1e-2)
    assert jnp.allclose(q_small, ref_f32, atol=5e-2, rtol=5e-2)

    # --- Larger batch: balanced 2-step grid with a ragged last block ---------
    big = 600
    x_big = jax.random.normal(k_x2, (big, NUM_OBS), jnp.float32)
    q_big = dqn_forward(x_big, *prepped)     # grid=(2,), tiles of 304 rows
    jax.block_until_ready(q_big)
    assert q_big.shape == (big, NUM_ACTIONS)
    ref_big = _ref_forward(x_big, *params, dtype=jnp.bfloat16)
    assert jnp.allclose(q_big, ref_big, atol=1e-2, rtol=1e-2)

    print("KERNEL_OK")
</pallas_src>

<mosaic_0001>
module attributes {stable_mosaic.version = 11 : i64} {
  func.func @dqn_kernel(%arg0: i32, %arg1: memref<16x290xf32, #tpu.memory_space<vmem>>, %arg2: memref<290x128xbf16, #tpu.memory_space<vmem>>, %arg3: memref<1x128xf32, #tpu.memory_space<vmem>>, %arg4: memref<128x128xbf16, #tpu.memory_space<vmem>>, %arg5: memref<1x128xf32, #tpu.memory_space<vmem>>, %arg6: memref<128x8xbf16, #tpu.memory_space<vmem>>, %arg7: memref<1x8xf32, #tpu.memory_space<vmem>>, %arg8: memref<16x8xf32, #tpu.memory_space<vmem>>) attributes {dimension_semantics = [#tpu.dimension_semantics<parallel>], iteration_bounds = array<i64: 1>, scalar_prefetch = 0 : i64, scratch_operands = 0 : i64, tpu.core_type = #tpu.core_type<tc>, window_params = [{transform_indices = @transform_0, window_bounds = array<i64: 16, 290>}, {pipeline_mode = #tpu.pipeline_mode<synchronous>, transform_indices = @transform_1, window_bounds = array<i64: 290, 128>}, {pipeline_mode = #tpu.pipeline_mode<synchronous>, transform_indices = @transform_2, window_bounds = array<i64: 1, 128>}, {pipeline_mode = #tpu.pipeline_mode<synchronous>, transform_indices = @transform_3, window_bounds = array<i64: 128, 128>}, {pipeline_mode = #tpu.pipeline_mode<synchronous>, transform_indices = @transform_4, window_bounds = array<i64: 1, 128>}, {pipeline_mode = #tpu.pipeline_mode<synchronous>, transform_indices = @transform_5, window_bounds = array<i64: 128, 8>}, {pipeline_mode = #tpu.pipeline_mode<synchronous>, transform_indices = @transform_6, window_bounds = array<i64: 1, 8>}, {transform_indices = @transform_7, window_bounds = array<i64: 16, 8>}]} {
    %c0 = arith.constant 0 : index
    %c0_0 = arith.constant 0 : index
    %0 = vector.load %arg1[%c0, %c0_0] : memref<16x290xf32, #tpu.memory_space<vmem>>, vector<16x290xf32>
    %1 = arith.truncf %0 : vector<16x290xf32> to vector<16x290xbf16>
    %c0_1 = arith.constant 0 : index
    %c0_2 = arith.constant 0 : index
    %2 = vector.load %arg2[%c0_1, %c0_2] : memref<290x128xbf16, #tpu.memory_space<vmem>>, vector<290x128xbf16>
    %cst = arith.constant dense<0.000000e+00> : vector<16x128xf32>
    %3 = tpu.matmul %1, %2, %cst {dimension_numbers = #tpu.dot_dimension_numbers<[1], [0], [0], [1], [0, 0, 1, 1], [], []>} : vector<16x290xbf16>, vector<290x128xbf16>, vector<16x128xf32> -> vector<16x128xf32>
    %c0_3 = arith.constant 0 : index
    %c0_4 = arith.constant 0 : index
    %4 = vector.load %arg3[%c0_3, %c0_4] : memref<1x128xf32, #tpu.memory_space<vmem>>, vector<1x128xf32>
    %5 = vector.broadcast %4 : vector<1x128xf32> to vector<16x128xf32>
    %6 = arith.addf %3, %5 : vector<16x128xf32>
    %cst_5 = arith.constant 0.000000e+00 : f32
    %7 = vector.broadcast %cst_5 : f32 to vector<16x128xf32>
    %8 = arith.maximumf %6, %7 : vector<16x128xf32>
    %9 = arith.truncf %8 : vector<16x128xf32> to vector<16x128xbf16>
    %c0_6 = arith.constant 0 : index
    %c0_7 = arith.constant 0 : index
    %10 = vector.load %arg4[%c0_6, %c0_7] : memref<128x128xbf16, #tpu.memory_space<vmem>>, vector<128x128xbf16>
    %cst_8 = arith.constant dense<0.000000e+00> : vector<16x128xf32>
    %11 = tpu.matmul %9, %10, %cst_8 {dimension_numbers = #tpu.dot_dimension_numbers<[1], [0], [0], [1], [0, 0, 1, 1], [], []>} : vector<16x128xbf16>, vector<128x128xbf16>, vector<16x128xf32> -> vector<16x128xf32>
    %c0_9 = arith.constant 0 : index
    %c0_10 = arith.constant 0 : index
    %12 = vector.load %arg5[%c0_9, %c0_10] : memref<1x128xf32, #tpu.memory_space<vmem>>, vector<1x128xf32>
    %13 = vector.broadcast %12 : vector<1x128xf32> to vector<16x128xf32>
    %14 = arith.addf %11, %13 : vector<16x128xf32>
    %cst_11 = arith.constant 0.000000e+00 : f32
    %15 = vector.broadcast %cst_11 : f32 to vector<16x128xf32>
    %16 = arith.maximumf %14, %15 : vector<16x128xf32>
    %17 = arith.truncf %16 : vector<16x128xf32> to vector<16x128xbf16>
    %c0_12 = arith.constant 0 : index
    %c0_13 = arith.constant 0 : index
    %18 = vector.load %arg6[%c0_12, %c0_13] : memref<128x8xbf16, #tpu.memory_space<vmem>>, vector<128x8xbf16>
    %cst_14 = arith.constant dense<0.000000e+00> : vector<16x8xf32>
    %19 = tpu.matmul %17, %18, %cst_14 {dimension_numbers = #tpu.dot_dimension_numbers<[1], [0], [0], [1], [0, 0, 1, 1], [], []>} : vector<16x128xbf16>, vector<128x8xbf16>, vector<16x8xf32> -> vector<16x8xf32>
    %c0_15 = arith.constant 0 : index
    %c0_16 = arith.constant 0 : index
    %20 = vector.load %arg7[%c0_15, %c0_16] : memref<1x8xf32, #tpu.memory_space<vmem>>, vector<1x8xf32>
    %21 = vector.broadcast %20 : vector<1x8xf32> to vector<16x8xf32>
    %22 = arith.addf %19, %21 : vector<16x8xf32>
    %c0_17 = arith.constant 0 : index
    %c0_18 = arith.constant 0 : index
    %23 = vector.load %arg8[%c0_17, %c0_18] : memref<16x8xf32, #tpu.memory_space<vmem>>, vector<16x8xf32>
    tpu.vector_store %arg8[%c0_17, %c0_18], %22 {strides = array<i32>} : memref<16x8xf32, #tpu.memory_space<vmem>>, vector<16x8xf32>,
    return
  }
  func.func @transform_0(%arg0: i32) -> (i32, i32) {
    %c0_i32 = arith.constant 0 : i32
    %c0_i32_0 = arith.constant 0 : i32
    return %arg0, %c0_i32 : i32, i32
  }
  func.func @transform_1(%arg0: i32) -> (i32, i32) {
    %c0_i32 = arith.constant 0 : i32
    %c0_i32_0 = arith.constant 0 : i32
    %c0_i32_1 = arith.constant 0 : i32
    return %c0_i32, %c0_i32_0 : i32, i32
  }
  func.func @transform_2(%arg0: i32) -> (i32, i32) {
    %c0_i32 = arith.constant 0 : i32
    %c0_i32_0 = arith.constant 0 : i32
    %c0_i32_1 = arith.constant 0 : i32
    return %c0_i32, %c0_i32_0 : i32, i32
  }
  func.func @transform_3(%arg0: i32) -> (i32, i32) {
    %c0_i32 = arith.constant 0 : i32
    %c0_i32_0 = arith.constant 0 : i32
    %c0_i32_1 = arith.constant 0 : i32
    return %c0_i32, %c0_i32_0 : i32, i32
  }
  func.func @transform_4(%arg0: i32) -> (i32, i32) {
    %c0_i32 = arith.constant 0 : i32
    %c0_i32_0 = arith.constant 0 : i32
    %c0_i32_1 = arith.constant 0 : i32
    return %c0_i32, %c0_i32_0 : i32, i32
  }
  func.func @transform_5(%arg0: i32) -> (i32, i32) {
    %c0_i32 = arith.constant 0 : i32
    %c0_i32_0 = arith.constant 0 : i32
    %c0_i32_1 = arith.constant 0 : i32
    return %c0_i32, %c0_i32_0 : i32, i32
  }
  func.func @transform_6(%arg0: i32) -> (i32, i32) {
    %c0_i32 = arith.constant 0 : i32
    %c0_i32_0 = arith.constant 0 : i32
    %c0_i32_1 = arith.constant 0 : i32
    return %c0_i32, %c0_i32_0 : i32, i32
  }
  func.func @transform_7(%arg0: i32) -> (i32, i32) {
    %c0_i32 = arith.constant 0 : i32
    %c0_i32_0 = arith.constant 0 : i32
    return %arg0, %c0_i32 : i32, i32
  }
}

</mosaic_0001>

<bundles_post_ra>
// kernel: dqn_forward.1
= control target key start
LH: loop header
LB: loop body
LE: loop exit
PB: predicated region body
PF: predicated region fallthrough
CT: control target
= control target key end

     0   :  { %12 = vsyncpa [#allocation3], 0  ;;  %s730_s24 = smov [#allocation2]   ;;  %s893_s0 = inlined_call_operand.vmem [shape: f32[16,290], index: 0, kind: input, shape index: {}]   ;;  %s894_s1 = inlined_call_operand.hbm [shape: bf16[290,128], index: 1, kind: input, shape index: {}]   ;;  %s895_s2 = inlined_call_operand.vmem [shape: f32[1,128], index: 2, kind: input, shape index: {}]   ;;  %s896_s3 = inlined_call_operand.vmem [shape: bf16[128,128], index: 3, kind: input, shape index: {}]   ;;  %s897_s4 = inlined_call_operand.vmem [shape: f32[1,128], index: 4, kind: input, shape index: {}]   ;;  %s898_s5 = inlined_call_operand.vmem [shape: bf16[128,8], index: 5, kind: input, shape index: {}]   ;;  %s899_s6 = inlined_call_operand.vmem [shape: f32[1,8], index: 6, kind: input, shape index: {}]   ;;  %s900_s7 = inlined_call_operand.vmem [shape: f32[16,8], index: 7, kind: output, shape index: {}]  }
   0x1   :  { %s20_s25 = sshll.u32 %s730_s24, 4  ;;  %s706_s28 = scalar_lea.hbm %s894_s1, 2368  ;;  %s21_s25 = int_to_ptr.vmem [resolvable:$true] %s20_s25 }
   0x2   :  { %p707_p0 = scmp.ne.s32.totalorder %s894_s1, %s706_s28  ;;  %p710_p1 = scmp.lt.u32.totalorder %s706_s28, %s894_s1 }
   0x4   :  { %p712_p2 = pnand %p710_p1, %p707_p0 }
   0x6   :  { %715 = shalt.err (!%p712_p2)
}
   0x7   :  { %s716_s10 = scalar_lea.vmem %s21_s25, 2368  ;;  %p721_p4 = scmp.lt.s32.totalorder %s21_s25, %s21_s25 }
   0x8   :  { %p717_p3 = scmp.ne.s32.totalorder %s21_s25, %s716_s10  ;;  %p722_p5 = scmp.lt.s32.totalorder %s716_s10, %s716_s10 }
   0xa   :  { %p723_p6 = por %p722_p5, %p721_p4 }
   0xc   :  { %p724_p7 = pnand %p723_p6, %p717_p3 }
   0xe   :  { %727 = shalt.err (!%p724_p7)
}
   0xf   :  { %s731_s11 = smov 64   ;;  %s732_s12 = smov 4  }
  0x10   :  { %26 = dma.hbm_to_vmem [thread:$0]  %s894_s1, 2368, %s21_s25, [#allocation3], %s731_s11, %s731_s11, %s732_s12  }
  0x11   :  { %728 = dma.done.wait [#allocation3], 2368  }
  0x12   :  { %729 = vsyncadd [#allocation3], 4294964928  ;;  %v733_v0 = vmov 0.0   ;;  %vm734_vm0 = vmmov 0   ;;  %v671_v1 = vld [vmem:[#allocation2 + $0x40] sm:$0xff]   ;;  %v673_v3 = vld [vmem:[#allocation2 + $0x48] sm:$0xff]  }
  0x13   :  { %616 = vmatprep.subr.bf16.mxu1 %v733_v0  ;;  %622 = vmatprep.mubr.msk.bf16.mxu1 %vm734_vm0, %v733_v0  ;;  %v672_v2 = vld [vmem:[#allocation2] sm:$0xff]   ;;  %v674_v4 = vld [vmem:[#allocation2 + $0x8] sm:$0xff]   ;;  %v675_v5 = vld [vmem:[#allocation2 + $0x50] sm:$0xff]   ;;  %vm209_vm1 = vcmask 1040384   ;;  %vm205_vm2 = vcmask 277504   ;;  %vm525_vm3 = vcmask 64512  }
  0x14   :  { %572 = vmatprep.subr.bf16.mxu0 %v671_v1  ;;  %v676_v6 = vld [vmem:[#allocation2 + $0x10] sm:$0xff]   ;;  %v677_v7 = vld [vmem:[#allocation2 + $0x58] sm:$0xff]   ;;  %v679_v9 = vld [vmem:[#allocation2 + $0x60] sm:$0xff]  }
  0x15   :  { %573 = vmatpush3.bf16.msra.mxu0 %v672_v2  ;;  %v678_v8 = vld [vmem:[#allocation2 + $0x18] sm:$0xff]   ;;  %v683_v10 = vld [vmem:[#allocation2 + $0x80] sm:$0xff]   ;;  %v686_v12 = vld [vmem:[#allocation2 + $0x88] sm:$0xff]  }
  0x16   :  { %574 = vmatprep.subr.bf16.mxu0 %v673_v3  ;;  %v680_v11 = vld [vmem:[#allocation2 + $0x20] sm:$0xff]   ;;  %617 = vmatpush3.bf16.msra.mxu1 %v683_v10  ;;  %v681_v13 = vld [vmem:[#allocation2 + $0x68] sm:$0xff]   ;;  %v684_v17 = vld [vmem:[#allocation2 + $0x70] sm:$0xff]  }
  0x17   :  { %618 = vmatprep.subr.bf16.mxu1 %v733_v0  ;;  %v42_v14 = vld [vmem:[%s893_s0 + $0x8] sm:$0xff]  ;;  %v45_v15 = vld [vmem:[%s893_s0 + $0x20] sm:$0xff]  ;;  %v689_v19 = vld [vmem:[#allocation2 + $0x90] ss:$0 sps:$4 sm:$0x11]  }
  0x18   :  { %v682_v16 = vld [vmem:[#allocation2 + $0x28] sm:$0xff]   ;;  %v48_v18 = vpack.c.bf16 %v45_v15, %v42_v14  ;;  %v43_v20 = vld [vmem:[%s893_s0 + $0x10] sm:$0xff]  ;;  %v211_v22 = vsel %vm209_vm1, %v689_v19, 0  ;;  %v690_v24 = vld [vmem:[%s896_s3] sm:$0xff]  }
  0x19   :  { %575 = vmatpush3.bf16.msra.mxu0 %v674_v4  ;;  %v46_v21 = vld [vmem:[%s893_s0 + $0x28] sm:$0xff]  ;;  %v685_v25 = vld [vmem:[#allocation2 + $0x30] sm:$0xff]   ;;  %v687_v26 = vld [vmem:[#allocation2 + $0x78] sm:$0xff]  }
  0x1a   :  { %576 = vmatprep.subr.bf16.mxu0 %v675_v5  ;;  %619 = vmatpush3.bf16.msra.mxu1 %v686_v12  ;;  %v49_v23 = vpack.c.bf16 %v46_v21, %v43_v20  ;;  %v688_v27 = vld [vmem:[#allocation2 + $0x38] sm:$0xff]   ;;  %v41_v28 = vld [vmem:[%s893_s0] sm:$0xff]  ;;  %v691_v30 = vld [vmem:[%s896_s3 + $0x8] sm:$0xff]  }
  0x1b   :  { %620 = vmatprep.subr.bf16.mxu1 %v733_v0  ;;  %245 = vmatprep.mubr.bf16.mxu0 %v48_v18  ;;  %v44_v29 = vld [vmem:[%s893_s0 + $0x18] sm:$0xff]  ;;  %v692_v31 = vld [vmem:[%s896_s3 + $0x10] sm:$0xff]   ;;  %v694_v34 = vld [vmem:[%s896_s3 + $0x20] sm:$0xff]  }
  0x1c   :  { %v47_v32 = vpack.c.bf16 %v44_v29, %v41_v28  ;;  %v693_v33 = vld [vmem:[%s896_s3 + $0x18] sm:$0xff]   ;;  %v695_v35 = vld [vmem:[%s896_s3 + $0x28] sm:$0xff]   ;;  %v696_v36 = vld [vmem:[%s896_s3 + $0x30] sm:$0xff]  }
  0x1d   :  { %577 = vmatpush3.bf16.msra.mxu0 %v676_v6  ;;  %v697_v37 = vld [vmem:[%s896_s3 + $0x38] sm:$0xff]   ;;  %v698_v38 = vld [vmem:[%s898_s5] sm:$0xff]   ;;  %v699_v39 = vld [vmem:[%s898_s5 + $0x8] sm:$0xff]  }
  0x1e   :  { %578 = vmatprep.subr.bf16.mxu0 %v677_v7  ;;  %621 = vmatpush3.bf16.msra.mxu1 %v211_v22  ;;  %v700_v40 = vld [vmem:[%s898_s5 + $0x10] sm:$0xff]   ;;  %v701_v41 = vld [vmem:[%s898_s5 + $0x18] sm:$0xff]   ;;  %v702_v42 = vld [vmem:[%s898_s5 + $0x20] sm:$0xff]  }
  0x1f   :  { %626 = vmatprep.subr.bf16.mxu1 %v733_v0  ;;  %v703_v43 = vld [vmem:[%s898_s5 + $0x28] sm:$0xff]   ;;  %v533_v50 = vld [vmem:[%s895_s2] ss:$0 sm:$0xff]  ;;  %v704_v62 = vld [vmem:[%s898_s5 + $0x30] sm:$0xff]  }
  0x20   :  { %v705_v63 = vld [vmem:[%s898_s5 + $0x38] sm:$0xff]   ;;  %v554_v1 = vld [vmem:[%s897_s4] ss:$0 sm:$0xff] }
  0x21   :  { %579 = vmatpush3.bf16.msra.mxu0 %v678_v8  ;;  %623 = vmatmul.mubr.msk.bf16.vlgmr.msra.gmra.mrb[0].mxu1 %vm205_vm2, %v49_v23 }
  0x22   :  { %580 = vmatprep.subr.bf16.mxu0 %v679_v9  ;;  %627 = vmatpush3.bf16.msra.mxu1 %v690_v24 }
  0x23   :  { %642 = vmatprep.mubr.msk.bf16.mxu1 %vm734_vm0, %v733_v0  ;;  %628 = vmatprep.subr.bf16.mxu1 %v733_v0 }
  0x25   :  { %581 = vmatpush3.bf16.msra.mxu0 %v680_v11 }
  0x26   :  { %582 = vmatprep.subr.bf16.mxu0 %v681_v13  ;;  %629 = vmatpush3.bf16.msra.mxu1 %v691_v30 }
  0x27   :  { %630 = vmatprep.subr.bf16.mxu1 %v733_v0 }
  0x29   :  { %583 = vmatpush3.bf16.msra.mxu0 %v682_v16 }
  0x2a   :  { %584 = vmatprep.subr.bf16.mxu0 %v684_v17  ;;  %631 = vmatpush3.bf16.msra.mxu1 %v692_v31 }
  0x2b   :  { %632 = vmatprep.subr.bf16.mxu1 %v733_v0 }
  0x2d   :  { %585 = vmatpush3.bf16.msra.mxu0 %v685_v25 }
  0x2e   :  { %586 = vmatprep.subr.bf16.mxu0 %v687_v26  ;;  %633 = vmatpush3.bf16.msra.mxu1 %v693_v33 }
  0x2f   :  { %634 = vmatprep.subr.bf16.mxu1 %v733_v0 }
  0x31   :  { %587 = vmatpush3.bf16.msra.mxu0 %v688_v27 }
  0x32   :  { %646 = vmatprep.subr.bf16.mxu0 %v733_v0  ;;  %635 = vmatpush3.bf16.msra.mxu1 %v694_v34 }
  0x33   :  { %636 = vmatprep.subr.bf16.mxu1 %v733_v0 }
  0x34   :  { %246 = vmatmul.mubr.bf16.vlgmr.msra.gmra.mrb[0].mxu0 %v47_v32 }
  0x35   :  { %662 = vmatprep.mubr.msk.bf16.mxu0 %vm734_vm0, %v733_v0  ;;  %647 = vmatpush3.bf16.msra.mxu0 %v698_v38 }
  0x36   :  { %637 = vmatpush3.bf16.msra.mxu1 %v695_v35  ;;  %648 = vmatprep.subr.bf16.mxu0 %v733_v0 }
  0x37   :  { %638 = vmatprep.subr.bf16.mxu1 %v733_v0 }
  0x39   :  { %649 = vmatpush3.bf16.msra.mxu0 %v699_v39 }
  0x3a   :  { %639 = vmatpush3.bf16.msra.mxu1 %v696_v36  ;;  %650 = vmatprep.subr.bf16.mxu0 %v733_v0 }
  0x3b   :  { %640 = vmatprep.subr.bf16.mxu1 %v733_v0 }
  0x3d   :  { %651 = vmatpush3.bf16.msra.mxu0 %v700_v40 }
  0x3e   :  { %641 = vmatpush3.bf16.msra.mxu1 %v697_v37  ;;  %652 = vmatprep.subr.bf16.mxu0 %v733_v0 }
  0x41   :  { %653 = vmatpush3.bf16.msra.mxu0 %v701_v41 }
  0x42   :  { %654 = vmatprep.subr.bf16.mxu0 %v733_v0 }
  0x45   :  { %655 = vmatpush3.bf16.msra.mxu0 %v702_v42 }
  0x46   :  { %656 = vmatprep.subr.bf16.mxu0 %v733_v0 }
  0x49   :  { %657 = vmatpush3.bf16.msra.mxu0 %v703_v43 }
  0x4a   :  { %658 = vmatprep.subr.bf16.mxu0 %v733_v0 }
  0x4d   :  { %659 = vmatpush3.bf16.msra.mxu0 %v704_v62 }
  0x4e   :  { %660 = vmatprep.subr.bf16.mxu0 %v733_v0  ;;  %v563_v0 = vld [vmem:[%s899_s6] ss:$0 sm:$0xff] }
  0x51   :  { %661 = vmatpush3.bf16.msra.mxu0 %v705_v63 }
  0xf4   :  { %v288_v44 = vpop.f32.mrb[0].mxu1 }
  0xf5   :  { %v624_v45 = vpop.f32.mrb[1].mxu1 }
  0xf6   :  { %v291_v46 = vpop.f32.mrb[2].mxu1 }
  0xf7   :  { %v625_v47 = vpop.f32.mrb[3].mxu1 }
 0x107   :  { %v588_v48 = vpop.f32.mrb[0].mxu0 }
 0x108   :  { %v589_v49 = vpop.f32.mrb[1].mxu0 }
 0x109   :  { %v590_v51 = vadd.f32 %v589_v49, %v588_v48  ;;  %v591_v52 = vpop.f32.mrb[2].mxu0 }
 0x10a   :  { %v592_v53 = vpop.f32.mrb[3].mxu0 }
 0x10b   :  { %v248_v54 = vadd.f32 %v590_v51, %v533_v50  ;;  %v593_v55 = vadd.f32 %v592_v53, %v591_v52 }
 0x10d   :  { %v289_v56 = vadd.f32 %v288_v44, %v248_v54  ;;  %v251_v57 = vadd.f32 %v593_v55, %v533_v50 }
 0x10f   :  { %v292_v58 = vadd.f32 %v291_v46, %v251_v57  ;;  %v295_v59 = vmax.f32 %v289_v56, 0.0 }
 0x111   :  { %v296_v60 = vmax.f32 %v292_v58, 0.0 }
 0x113   :  { %v297_v61 = vpack.c.bf16 %v296_v60, %v295_v59 }
 0x115   :  { %643 = vmatmul.mubr.bf16.vlgmr.msra.gmra.mrb[4].mxu1 %v297_v61 }
 0x1e8   :  { %v403_v2 = vpop.f32.mrb[4].mxu1 }
 0x1e9   :  { %v404_v3 = vadd.f32 %v554_v1, %v403_v2  ;;  %v644_v4 = vpop.f32.mrb[5].mxu1 }
 0x1ea   :  { %v406_v5 = vpop.f32.mrb[6].mxu1 }
 0x1eb   :  { %v407_v6 = vadd.f32 %v554_v1, %v406_v5  ;;  %v645_v7 = vpop.f32.mrb[7].mxu1  ;;  %v410_v8 = vmax.f32 %v404_v3, 0.0 }
 0x1ed   :  { %v411_v9 = vmax.f32 %v407_v6, 0.0 }
 0x1ef   :  { %v412_v10 = vpack.c.bf16 %v411_v9, %v410_v8 }
 0x1f1   :  { %663 = vmatmul.mubr.bf16.vlgmr.msra.gmra.mrb[4].mxu0 %v412_v10 }
 0x2c4   :  { %v518_v11 = vpop.f32.mrb[4].mxu0 }
 0x2c5   :  { %v519_v12 = vadd.f32 %v563_v0, %v518_v11  ;;  %v664_v13 = vpop.f32.mrb[5].mxu0 }
 0x2c6   :  { %v521_v14 = vpop.f32.mrb[6].mxu0 }
 0x2c7   :  { %526 = vst.msk [vmem:[%s900_s7] sm:$0xff] %vm525_vm3, %v519_v12  ;;  %v522_v15 = vadd.f32 %v563_v0, %v521_v14  ;;  %v665_v16 = vpop.f32.mrb[7].mxu0 }
 0x2c9   :  { %527 = vst.msk [vmem:[%s900_s7 + $0x8] sm:$0xff] %vm525_vm3, %v522_v15 }
 0x2ca   :  { %532 = vsyncpa [#allocation3], 1 }

</bundles_post_ra>
